<compile_context>
chip_gen: v6e
topology: v6e:2x2x1
jax: 0.10.0
libtpu: 0.0.40
codegen_flags: <defaults>
</compile_context>

<pallas_src>
import numpy as np
import jax
import jax.numpy as jnp
from jax import lax
from jax.experimental import pallas as pl
from jax.experimental.pallas import tpu as pltpu

THRESH = 0.5
DECAY = 0.2
TIME_WINDOW = 8

B = 2
CIN, H, W = 4, 16, 16
COUT, K, STRIDE, PAD = 8, 3, 1, 1
POOL = 2
HP, WP = H // POOL, W // POOL
FC1_IN, FC1_OUT = COUT * HP * WP, 32
FC2_IN, FC2_OUT = FC1_OUT, 10

KK = K * K * CIN          # 36 im2col depth
N_HW = H * W              # 256 spatial positions
N_POOL = HP * WP          # 64 pooled positions
FC_PAD = 128              # lane-padded fc width

# TODO(synk): dropout entries (net params >= 10) and ActFun's surrogate
# gradient (backward) are not implemented — forward-only, deterministic config.


# ----------------------------- Pallas kernel -------------------------------

def _scnn_kernel(wconv_ref, xcol_ref, poolt_ref, w1f_ref, w2f_ref, out_ref,
                 pre_ref, cmem_ref, cspk_ref, pooled_ref,
                 h1mem_ref, h1spk_ref, h2mem_ref, h2spk_ref, h2sum_ref):
    # Time-invariant conv pre-activation, computed ONCE.
    # wconv_ref is the conv weight block-expanded over batch so a single matmul
    # directly yields rows ordered (cout, batch): [16, 256], lane-dense.
    pre_ref[...] = jnp.dot(wconv_ref[...], xcol_ref[...],
                           preferred_element_type=jnp.float32)

    cmem_ref[...] = jnp.zeros_like(cmem_ref)
    cspk_ref[...] = jnp.zeros_like(cspk_ref)
    h1mem_ref[...] = jnp.zeros_like(h1mem_ref)
    h1spk_ref[...] = jnp.zeros_like(h1spk_ref)
    h2mem_ref[...] = jnp.zeros_like(h2mem_ref)
    h2spk_ref[...] = jnp.zeros_like(h2spk_ref)
    h2sum_ref[...] = jnp.zeros_like(h2sum_ref)

    @pl.loop(0, TIME_WINDOW)
    def _(t):
        # conv-layer LIF (membrane update + heaviside) on [16, 256]
        c_mem = cmem_ref[...] * DECAY * (1.0 - cspk_ref[...]) + pre_ref[...]
        c_spk = (c_mem > THRESH).astype(jnp.float32)
        cmem_ref[...] = c_mem
        cspk_ref[...] = c_spk

        # 2x2 average pool as one small matmul: [16,256] @ [256,64] -> [16,64]
        # rows stay (cout, batch), cols become (ph, pw)
        pooled_ref[...] = jnp.dot(c_spk, poolt_ref[...],
                                  preferred_element_type=jnp.float32)

        # fc1: contraction over (cout, ph, pw); decomposed per conv channel so
        # the batch axis stays on sublanes (no in-kernel transpose needed).
        pre1 = jnp.zeros((B, FC_PAD), jnp.float32)
        for c in range(COUT):
            pre1 = pre1 + jnp.dot(
                pooled_ref[B * c:B * (c + 1), :],          # [2, 64]
                w1f_ref[N_POOL * c:N_POOL * (c + 1), :],   # [64, 128]
                preferred_element_type=jnp.float32)

        h1_mem = h1mem_ref[...] * DECAY * (1.0 - h1spk_ref[...]) + pre1
        h1_spk = (h1_mem > THRESH).astype(jnp.float32)
        h1mem_ref[...] = h1_mem
        h1spk_ref[...] = h1_spk

        # fc2: [2,128] @ [128,128]
        pre2 = jnp.dot(h1_spk, w2f_ref[...], preferred_element_type=jnp.float32)
        h2_mem = h2mem_ref[...] * DECAY * (1.0 - h2spk_ref[...]) + pre2
        h2_spk = (h2_mem > THRESH).astype(jnp.float32)
        h2mem_ref[...] = h2_mem
        h2spk_ref[...] = h2_spk
        h2sum_ref[...] = h2sum_ref[...] + h2_spk

    out_ref[...] = h2sum_ref[...] * (1.0 / TIME_WINDOW)


_VMEM = pl.BlockSpec(memory_space=pltpu.MemorySpace.VMEM)


def scnn_pallas_call(wconv_blk, xcol_blk, poolt, w1f, w2f):
    return pl.pallas_call(
        _scnn_kernel,
        out_shape=jax.ShapeDtypeStruct((B, FC_PAD), jnp.float32),
        in_specs=[_VMEM] * 5,
        out_specs=_VMEM,
        scratch_shapes=[
            pltpu.VMEM((COUT * B, N_HW), jnp.float32),   # pre_conv
            pltpu.VMEM((COUT * B, N_HW), jnp.float32),   # c_mem
            pltpu.VMEM((COUT * B, N_HW), jnp.float32),   # c_spk
            pltpu.VMEM((COUT * B, N_POOL), jnp.float32), # pooled
            pltpu.VMEM((B, FC_PAD), jnp.float32),        # h1_mem
            pltpu.VMEM((B, FC_PAD), jnp.float32),        # h1_spk
            pltpu.VMEM((B, FC_PAD), jnp.float32),        # h2_mem
            pltpu.VMEM((B, FC_PAD), jnp.float32),        # h2_spk
            pltpu.VMEM((B, FC_PAD), jnp.float32),        # h2_sum
        ],
    )(wconv_blk, xcol_blk, poolt, w1f, w2f)


# ------------------------------- JAX glue ----------------------------------

def _im2col_cols(x_nchw):
    """im2col, transposed: [B*K*K*CIN, H*W]; rows (b, kh, kw, cin), cols (h, w)."""
    x = jnp.transpose(x_nchw.astype(jnp.float32), (0, 2, 3, 1))        # NHWC
    xp = jnp.pad(x, ((0, 0), (PAD, PAD), (PAD, PAD), (0, 0)))
    cols = []
    for i in range(K):
        for j in range(K):
            cols.append(lax.slice(xp, (0, i, j, 0), (B, i + H, j + W, CIN)))
    patches = jnp.stack(cols, axis=3)            # [B, H, W, K*K, CIN]
    patches = patches.reshape(B, N_HW, KK)       # cols ordered (kh, kw, cin)
    return jnp.transpose(patches, (0, 2, 1)).reshape(B * KK, N_HW)


def _conv_weight_block(w_conv):
    """Conv weight block-expanded over batch: [(c,b), (b',k)] = w[c,k]*eye[b,b']."""
    w_colt = jnp.transpose(w_conv, (0, 2, 3, 1)).reshape(COUT, KK)     # (kh,kw,cin)
    eye = jnp.eye(B, dtype=jnp.float32)
    return jnp.einsum('ck,bd->cbdk', w_colt, eye).reshape(COUT * B, B * KK)


def _pool_matrix():
    """[H*W, HP*WP] averaging matrix: 0.25 where (h//2,w//2) == (ph,pw)."""
    sel = np.zeros((H, HP), np.float32)
    for h in range(H):
        sel[h, h // POOL] = 1.0
    return jnp.asarray(np.kron(sel, sel) * (1.0 / (POOL * POOL)))


def _fc1_weight_folded(w_fc1):
    """fc1 weight with rows reordered (c, ph, pw) and cols padded to 128."""
    w = w_fc1.T.reshape(HP, WP, COUT, FC1_OUT)                 # (ph, pw, c, o)
    w = jnp.transpose(w, (2, 0, 1, 3)).reshape(COUT * N_POOL, FC1_OUT)
    return jnp.pad(w, ((0, 0), (0, FC_PAD - FC1_OUT)))


def _fc2_weight_padded(w_fc2):
    return jnp.pad(w_fc2.T, ((0, FC_PAD - FC2_IN), (0, FC_PAD - FC2_OUT)))


@jax.jit
def scnn_forward(x_nchw, w_conv, w_fc1, w_fc2):
    xcol_blk = _im2col_cols(x_nchw)          # [72, 256]
    wconv_blk = _conv_weight_block(w_conv)   # [16, 72]
    poolt = _pool_matrix()                   # [256, 64]
    w1f = _fc1_weight_folded(w_fc1)          # [512, 128]
    w2f = _fc2_weight_padded(w_fc2)          # [128, 128]
    out = scnn_pallas_call(wconv_blk, xcol_blk, poolt, w1f, w2f)
    return out[:, :FC2_OUT]


def reference_forward(x_nchw, w_conv, w_fc1, w_fc2):
    """Plain-JAX reference (lax.conv path), same semantics as the PyTorch SCNN."""
    prec = lax.Precision.HIGHEST
    x = x_nchw.astype(jnp.float32)
    c_mem = jnp.zeros((B, COUT, H, W), jnp.float32)
    c_spk = jnp.zeros_like(c_mem)
    h1_mem = jnp.zeros((B, FC1_OUT)); h1_spk = jnp.zeros((B, FC1_OUT))
    h2_mem = jnp.zeros((B, FC2_OUT)); h2_spk = jnp.zeros((B, FC2_OUT))
    h2_sum = jnp.zeros((B, FC2_OUT))
    for _ in range(TIME_WINDOW):
        pre = lax.conv_general_dilated(
            x, w_conv, window_strides=(STRIDE, STRIDE),
            padding=((PAD, PAD), (PAD, PAD)),
            dimension_numbers=('NCHW', 'OIHW', 'NCHW'), precision=prec)
        c_mem = c_mem * DECAY * (1.0 - c_spk) + pre
        c_spk = (c_mem > THRESH).astype(jnp.float32)
        pooled = c_spk.reshape(B, COUT, HP, POOL, WP, POOL).mean(axis=(3, 5))
        xf = jnp.transpose(pooled, (0, 2, 3, 1)).reshape(B, -1)   # (h, w, c) flatten
        pre1 = jnp.dot(xf, w_fc1.T, precision=prec)
        h1_mem = h1_mem * DECAY * (1.0 - h1_spk) + pre1
        h1_spk = (h1_mem > THRESH).astype(jnp.float32)
        pre2 = jnp.dot(h1_spk, w_fc2.T, precision=prec)
        h2_mem = h2_mem * DECAY * (1.0 - h2_spk) + pre2
        h2_spk = (h2_mem > THRESH).astype(jnp.float32)
        h2_sum = h2_sum + h2_spk
    return h2_sum / float(TIME_WINDOW)


if __name__ == "__main__":
    key = jax.random.PRNGKey(0)
    k_x, k_c, k_f1, k_f2 = jax.random.split(key, 4)

    x = jax.random.normal(k_x, (B, CIN, H, W), jnp.float32)
    w_conv = jax.random.normal(k_c, (COUT, CIN, K, K), jnp.float32) * np.sqrt(2.0 / (CIN * K * K))
    w_fc1 = jax.random.normal(k_f1, (FC1_OUT, FC1_IN), jnp.float32) * np.sqrt(2.0 / FC1_IN)
    w_fc2 = jax.random.normal(k_f2, (FC2_OUT, FC2_IN), jnp.float32) * np.sqrt(2.0 / FC2_IN)

    out = scnn_forward(x, w_conv, w_fc1, w_fc2)
    out = jax.block_until_ready(out)

    ref = reference_forward(x, w_conv, w_fc1, w_fc2)
    err = float(jnp.max(jnp.abs(out - ref)))
    if err > 1e-3:
        raise RuntimeError(f"Pallas SCNN mismatch vs reference: max abs err {err}")

    print("KERNEL_OK")
</pallas_src>

<mosaic_0001>
module attributes {stable_mosaic.version = 11 : i64} {
  func.func @_scnn_kernel(%arg0: memref<16x72xf32, #tpu.memory_space<vmem>>, %arg1: memref<72x256xf32, #tpu.memory_space<vmem>>, %arg2: memref<256x64xf32, #tpu.memory_space<vmem>>, %arg3: memref<512x128xf32, #tpu.memory_space<vmem>>, %arg4: memref<128x128xf32, #tpu.memory_space<vmem>>, %arg5: memref<2x128xf32, #tpu.memory_space<vmem>>, %arg6: memref<16x256xf32, #tpu.memory_space<vmem>>, %arg7: memref<16x256xf32, #tpu.memory_space<vmem>>, %arg8: memref<16x256xf32, #tpu.memory_space<vmem>>, %arg9: memref<16x64xf32, #tpu.memory_space<vmem>>, %arg10: memref<2x128xf32, #tpu.memory_space<vmem>>, %arg11: memref<2x128xf32, #tpu.memory_space<vmem>>, %arg12: memref<2x128xf32, #tpu.memory_space<vmem>>, %arg13: memref<2x128xf32, #tpu.memory_space<vmem>>, %arg14: memref<2x128xf32, #tpu.memory_space<vmem>>) attributes {dimension_semantics = [], scalar_prefetch = 0 : i64, scratch_operands = 9 : i64, tpu.core_type = #tpu.core_type<tc>} {
    %c0 = arith.constant 0 : index
    %c0_0 = arith.constant 0 : index
    %0 = vector.load %arg0[%c0, %c0_0] : memref<16x72xf32, #tpu.memory_space<vmem>>, vector<16x72xf32>
    %c0_1 = arith.constant 0 : index
    %c0_2 = arith.constant 0 : index
    %1 = vector.load %arg1[%c0_1, %c0_2] : memref<72x256xf32, #tpu.memory_space<vmem>>, vector<72x256xf32>
    %cst = arith.constant dense<0.000000e+00> : vector<16x256xf32>
    %2 = tpu.matmul %0, %1, %cst {dimension_numbers = #tpu.dot_dimension_numbers<[1], [0], [0], [1], [0, 0, 1, 1], [], []>} : vector<16x72xf32>, vector<72x256xf32>, vector<16x256xf32> -> vector<16x256xf32>
    %c0_3 = arith.constant 0 : index
    %c0_4 = arith.constant 0 : index
    %3 = vector.load %arg6[%c0_3, %c0_4] : memref<16x256xf32, #tpu.memory_space<vmem>>, vector<16x256xf32>
    tpu.vector_store %arg6[%c0_3, %c0_4], %2 {strides = array<i32>} : memref<16x256xf32, #tpu.memory_space<vmem>>, vector<16x256xf32>,
    %cst_5 = arith.constant 0.000000e+00 : f32
    %4 = vector.broadcast %cst_5 : f32 to vector<16x256xf32>
    %c0_6 = arith.constant 0 : index
    %c0_7 = arith.constant 0 : index
    %5 = vector.load %arg7[%c0_6, %c0_7] : memref<16x256xf32, #tpu.memory_space<vmem>>, vector<16x256xf32>
    tpu.vector_store %arg7[%c0_6, %c0_7], %4 {strides = array<i32>} : memref<16x256xf32, #tpu.memory_space<vmem>>, vector<16x256xf32>,
    %cst_8 = arith.constant 0.000000e+00 : f32
    %6 = vector.broadcast %cst_8 : f32 to vector<16x256xf32>
    %c0_9 = arith.constant 0 : index
    %c0_10 = arith.constant 0 : index
    %7 = vector.load %arg8[%c0_9, %c0_10] : memref<16x256xf32, #tpu.memory_space<vmem>>, vector<16x256xf32>
    tpu.vector_store %arg8[%c0_9, %c0_10], %6 {strides = array<i32>} : memref<16x256xf32, #tpu.memory_space<vmem>>, vector<16x256xf32>,
    %cst_11 = arith.constant 0.000000e+00 : f32
    %8 = vector.broadcast %cst_11 : f32 to vector<2x128xf32>
    %c0_12 = arith.constant 0 : index
    %c0_13 = arith.constant 0 : index
    %9 = vector.load %arg10[%c0_12, %c0_13] : memref<2x128xf32, #tpu.memory_space<vmem>>, vector<2x128xf32>
    tpu.vector_store %arg10[%c0_12, %c0_13], %8 {strides = array<i32>} : memref<2x128xf32, #tpu.memory_space<vmem>>, vector<2x128xf32>,
    %cst_14 = arith.constant 0.000000e+00 : f32
    %10 = vector.broadcast %cst_14 : f32 to vector<2x128xf32>
    %c0_15 = arith.constant 0 : index
    %c0_16 = arith.constant 0 : index
    %11 = vector.load %arg11[%c0_15, %c0_16] : memref<2x128xf32, #tpu.memory_space<vmem>>, vector<2x128xf32>
    tpu.vector_store %arg11[%c0_15, %c0_16], %10 {strides = array<i32>} : memref<2x128xf32, #tpu.memory_space<vmem>>, vector<2x128xf32>,
    %cst_17 = arith.constant 0.000000e+00 : f32
    %12 = vector.broadcast %cst_17 : f32 to vector<2x128xf32>
    %c0_18 = arith.constant 0 : index
    %c0_19 = arith.constant 0 : index
    %13 = vector.load %arg12[%c0_18, %c0_19] : memref<2x128xf32, #tpu.memory_space<vmem>>, vector<2x128xf32>
    tpu.vector_store %arg12[%c0_18, %c0_19], %12 {strides = array<i32>} : memref<2x128xf32, #tpu.memory_space<vmem>>, vector<2x128xf32>,
    %cst_20 = arith.constant 0.000000e+00 : f32
    %14 = vector.broadcast %cst_20 : f32 to vector<2x128xf32>
    %c0_21 = arith.constant 0 : index
    %c0_22 = arith.constant 0 : index
    %15 = vector.load %arg13[%c0_21, %c0_22] : memref<2x128xf32, #tpu.memory_space<vmem>>, vector<2x128xf32>
    tpu.vector_store %arg13[%c0_21, %c0_22], %14 {strides = array<i32>} : memref<2x128xf32, #tpu.memory_space<vmem>>, vector<2x128xf32>,
    %cst_23 = arith.constant 0.000000e+00 : f32
    %16 = vector.broadcast %cst_23 : f32 to vector<2x128xf32>
    %c0_24 = arith.constant 0 : index
    %c0_25 = arith.constant 0 : index
    %17 = vector.load %arg14[%c0_24, %c0_25] : memref<2x128xf32, #tpu.memory_space<vmem>>, vector<2x128xf32>
    tpu.vector_store %arg14[%c0_24, %c0_25], %16 {strides = array<i32>} : memref<2x128xf32, #tpu.memory_space<vmem>>, vector<2x128xf32>,
    %c0_i32 = arith.constant 0 : i32
    %c8_i32 = arith.constant 8 : i32
    %18 = arith.addi %c0_i32, %c8_i32 : i32
    %c1_i32 = arith.constant 1 : i32
    scf.for %arg15 = %c0_i32 to %18 step %c1_i32  : i32 {
      %c0_31 = arith.constant 0 : index
      %c0_32 = arith.constant 0 : index
      %23 = vector.load %arg7[%c0_31, %c0_32] : memref<16x256xf32, #tpu.memory_space<vmem>>, vector<16x256xf32>
      %cst_33 = arith.constant 2.000000e-01 : f32
      %24 = vector.broadcast %cst_33 : f32 to vector<16x256xf32>
      %25 = arith.mulf %23, %24 : vector<16x256xf32>
      %c0_34 = arith.constant 0 : index
      %c0_35 = arith.constant 0 : index
      %26 = vector.load %arg8[%c0_34, %c0_35] : memref<16x256xf32, #tpu.memory_space<vmem>>, vector<16x256xf32>
      %cst_36 = arith.constant 1.000000e+00 : f32
      %27 = vector.broadcast %cst_36 : f32 to vector<16x256xf32>
      %28 = arith.subf %27, %26 : vector<16x256xf32>
      %29 = arith.mulf %25, %28 : vector<16x256xf32>
      %c0_37 = arith.constant 0 : index
      %c0_38 = arith.constant 0 : index
      %30 = vector.load %arg6[%c0_37, %c0_38] : memref<16x256xf32, #tpu.memory_space<vmem>>, vector<16x256xf32>
      %31 = arith.addf %29, %30 : vector<16x256xf32>
      %cst_39 = arith.constant 5.000000e-01 : f32
      %32 = vector.broadcast %cst_39 : f32 to vector<16x256xf32>
      %33 = arith.cmpf ogt, %31, %32 : vector<16x256xf32>
      %34 = arith.extui %33 : vector<16x256xi1> to vector<16x256xi32>
      %35 = arith.sitofp %34 : vector<16x256xi32> to vector<16x256xf32>
      %c0_40 = arith.constant 0 : index
      %c0_41 = arith.constant 0 : index
      %36 = vector.load %arg7[%c0_40, %c0_41] : memref<16x256xf32, #tpu.memory_space<vmem>>, vector<16x256xf32>
      tpu.vector_store %arg7[%c0_40, %c0_41], %31 {strides = array<i32>} : memref<16x256xf32, #tpu.memory_space<vmem>>, vector<16x256xf32>,
      %c0_42 = arith.constant 0 : index
      %c0_43 = arith.constant 0 : index
      %37 = vector.load %arg8[%c0_42, %c0_43] : memref<16x256xf32, #tpu.memory_space<vmem>>, vector<16x256xf32>
      tpu.vector_store %arg8[%c0_42, %c0_43], %35 {strides = array<i32>} : memref<16x256xf32, #tpu.memory_space<vmem>>, vector<16x256xf32>,
      %c0_44 = arith.constant 0 : index
      %c0_45 = arith.constant 0 : index
      %38 = vector.load %arg2[%c0_44, %c0_45] : memref<256x64xf32, #tpu.memory_space<vmem>>, vector<256x64xf32>
      %cst_46 = arith.constant dense<0.000000e+00> : vector<16x64xf32>
      %39 = tpu.matmul %35, %38, %cst_46 {dimension_numbers = #tpu.dot_dimension_numbers<[1], [0], [0], [1], [0, 0, 1, 1], [], []>} : vector<16x256xf32>, vector<256x64xf32>, vector<16x64xf32> -> vector<16x64xf32>
      %c0_47 = arith.constant 0 : index
      %c0_48 = arith.constant 0 : index
      %40 = vector.load %arg9[%c0_47, %c0_48] : memref<16x64xf32, #tpu.memory_space<vmem>>, vector<16x64xf32>
      tpu.vector_store %arg9[%c0_47, %c0_48], %39 {strides = array<i32>} : memref<16x64xf32, #tpu.memory_space<vmem>>, vector<16x64xf32>,
      %cst_49 = arith.constant 0.000000e+00 : f32
      %41 = vector.broadcast %cst_49 : f32 to vector<2x128xf32>
      %c0_50 = arith.constant 0 : index
      %c0_51 = arith.constant 0 : index
      %42 = vector.load %arg9[%c0_50, %c0_51] : memref<16x64xf32, #tpu.memory_space<vmem>>, vector<2x64xf32>
      %c0_52 = arith.constant 0 : index
      %c0_53 = arith.constant 0 : index
      %43 = vector.load %arg3[%c0_52, %c0_53] : memref<512x128xf32, #tpu.memory_space<vmem>>, vector<64x128xf32>
      %cst_54 = arith.constant dense<0.000000e+00> : vector<2x128xf32>
      %44 = tpu.matmul %42, %43, %cst_54 {dimension_numbers = #tpu.dot_dimension_numbers<[1], [0], [0], [1], [0, 0, 1, 1], [], []>} : vector<2x64xf32>, vector<64x128xf32>, vector<2x128xf32> -> vector<2x128xf32>
      %45 = arith.addf %41, %44 : vector<2x128xf32>
      %c2 = arith.constant 2 : index
      %c0_55 = arith.constant 0 : index
      %46 = vector.load %arg9[%c2, %c0_55] : memref<16x64xf32, #tpu.memory_space<vmem>>, vector<2x64xf32>
      %c64 = arith.constant 64 : index
      %c0_56 = arith.constant 0 : index
      %47 = vector.load %arg3[%c64, %c0_56] : memref<512x128xf32, #tpu.memory_space<vmem>>, vector<64x128xf32>
      %cst_57 = arith.constant dense<0.000000e+00> : vector<2x128xf32>
      %48 = tpu.matmul %46, %47, %cst_57 {dimension_numbers = #tpu.dot_dimension_numbers<[1], [0], [0], [1], [0, 0, 1, 1], [], []>} : vector<2x64xf32>, vector<64x128xf32>, vector<2x128xf32> -> vector<2x128xf32>
      %49 = arith.addf %45, %48 : vector<2x128xf32>
      %c4 = arith.constant 4 : index
      %c0_58 = arith.constant 0 : index
      %50 = vector.load %arg9[%c4, %c0_58] : memref<16x64xf32, #tpu.memory_space<vmem>>, vector<2x64xf32>
      %c128 = arith.constant 128 : index
      %c0_59 = arith.constant 0 : index
      %51 = vector.load %arg3[%c128, %c0_59] : memref<512x128xf32, #tpu.memory_space<vmem>>, vector<64x128xf32>
      %cst_60 = arith.constant dense<0.000000e+00> : vector<2x128xf32>
      %52 = tpu.matmul %50, %51, %cst_60 {dimension_numbers = #tpu.dot_dimension_numbers<[1], [0], [0], [1], [0, 0, 1, 1], [], []>} : vector<2x64xf32>, vector<64x128xf32>, vector<2x128xf32> -> vector<2x128xf32>
      %53 = arith.addf %49, %52 : vector<2x128xf32>
      %c6 = arith.constant 6 : index
      %c0_61 = arith.constant 0 : index
      %54 = vector.load %arg9[%c6, %c0_61] : memref<16x64xf32, #tpu.memory_space<vmem>>, vector<2x64xf32>
      %c192 = arith.constant 192 : index
      %c0_62 = arith.constant 0 : index
      %55 = vector.load %arg3[%c192, %c0_62] : memref<512x128xf32, #tpu.memory_space<vmem>>, vector<64x128xf32>
      %cst_63 = arith.constant dense<0.000000e+00> : vector<2x128xf32>
      %56 = tpu.matmul %54, %55, %cst_63 {dimension_numbers = #tpu.dot_dimension_numbers<[1], [0], [0], [1], [0, 0, 1, 1], [], []>} : vector<2x64xf32>, vector<64x128xf32>, vector<2x128xf32> -> vector<2x128xf32>
      %57 = arith.addf %53, %56 : vector<2x128xf32>
      %c8 = arith.constant 8 : index
      %c0_64 = arith.constant 0 : index
      %58 = vector.load %arg9[%c8, %c0_64] : memref<16x64xf32, #tpu.memory_space<vmem>>, vector<2x64xf32>
      %c256 = arith.constant 256 : index
      %c0_65 = arith.constant 0 : index
      %59 = vector.load %arg3[%c256, %c0_65] : memref<512x128xf32, #tpu.memory_space<vmem>>, vector<64x128xf32>
      %cst_66 = arith.constant dense<0.000000e+00> : vector<2x128xf32>
      %60 = tpu.matmul %58, %59, %cst_66 {dimension_numbers = #tpu.dot_dimension_numbers<[1], [0], [0], [1], [0, 0, 1, 1], [], []>} : vector<2x64xf32>, vector<64x128xf32>, vector<2x128xf32> -> vector<2x128xf32>
      %61 = arith.addf %57, %60 : vector<2x128xf32>
      %c10 = arith.constant 10 : index
      %c0_67 = arith.constant 0 : index
      %62 = vector.load %arg9[%c10, %c0_67] : memref<16x64xf32, #tpu.memory_space<vmem>>, vector<2x64xf32>
      %c320 = arith.constant 320 : index
      %c0_68 = arith.constant 0 : index
      %63 = vector.load %arg3[%c320, %c0_68] : memref<512x128xf32, #tpu.memory_space<vmem>>, vector<64x128xf32>
      %cst_69 = arith.constant dense<0.000000e+00> : vector<2x128xf32>
      %64 = tpu.matmul %62, %63, %cst_69 {dimension_numbers = #tpu.dot_dimension_numbers<[1], [0], [0], [1], [0, 0, 1, 1], [], []>} : vector<2x64xf32>, vector<64x128xf32>, vector<2x128xf32> -> vector<2x128xf32>
      %65 = arith.addf %61, %64 : vector<2x128xf32>
      %c12 = arith.constant 12 : index
      %c0_70 = arith.constant 0 : index
      %66 = vector.load %arg9[%c12, %c0_70] : memref<16x64xf32, #tpu.memory_space<vmem>>, vector<2x64xf32>
      %c384 = arith.constant 384 : index
      %c0_71 = arith.constant 0 : index
      %67 = vector.load %arg3[%c384, %c0_71] : memref<512x128xf32, #tpu.memory_space<vmem>>, vector<64x128xf32>
      %cst_72 = arith.constant dense<0.000000e+00> : vector<2x128xf32>
      %68 = tpu.matmul %66, %67, %cst_72 {dimension_numbers = #tpu.dot_dimension_numbers<[1], [0], [0], [1], [0, 0, 1, 1], [], []>} : vector<2x64xf32>, vector<64x128xf32>, vector<2x128xf32> -> vector<2x128xf32>
      %69 = arith.addf %65, %68 : vector<2x128xf32>
      %c14 = arith.constant 14 : index
      %c0_73 = arith.constant 0 : index
      %70 = vector.load %arg9[%c14, %c0_73] : memref<16x64xf32, #tpu.memory_space<vmem>>, vector<2x64xf32>
      %c448 = arith.constant 448 : index
      %c0_74 = arith.constant 0 : index
      %71 = vector.load %arg3[%c448, %c0_74] : memref<512x128xf32, #tpu.memory_space<vmem>>, vector<64x128xf32>
      %cst_75 = arith.constant dense<0.000000e+00> : vector<2x128xf32>
      %72 = tpu.matmul %70, %71, %cst_75 {dimension_numbers = #tpu.dot_dimension_numbers<[1], [0], [0], [1], [0, 0, 1, 1], [], []>} : vector<2x64xf32>, vector<64x128xf32>, vector<2x128xf32> -> vector<2x128xf32>
      %73 = arith.addf %69, %72 : vector<2x128xf32>
      %c0_76 = arith.constant 0 : index
      %c0_77 = arith.constant 0 : index
      %74 = vector.load %arg10[%c0_76, %c0_77] : memref<2x128xf32, #tpu.memory_space<vmem>>, vector<2x128xf32>
      %cst_78 = arith.constant 2.000000e-01 : f32
      %75 = vector.broadcast %cst_78 : f32 to vector<2x128xf32>
      %76 = arith.mulf %74, %75 : vector<2x128xf32>
      %c0_79 = arith.constant 0 : index
      %c0_80 = arith.constant 0 : index
      %77 = vector.load %arg11[%c0_79, %c0_80] : memref<2x128xf32, #tpu.memory_space<vmem>>, vector<2x128xf32>
      %cst_81 = arith.constant 1.000000e+00 : f32
      %78 = vector.broadcast %cst_81 : f32 to vector<2x128xf32>
      %79 = arith.subf %78, %77 : vector<2x128xf32>
      %80 = arith.mulf %76, %79 : vector<2x128xf32>
      %81 = arith.addf %80, %73 : vector<2x128xf32>
      %cst_82 = arith.constant 5.000000e-01 : f32
      %82 = vector.broadcast %cst_82 : f32 to vector<2x128xf32>
      %83 = arith.cmpf ogt, %81, %82 : vector<2x128xf32>
      %84 = arith.extui %83 : vector<2x128xi1> to vector<2x128xi32>
      %85 = arith.sitofp %84 : vector<2x128xi32> to vector<2x128xf32>
      %c0_83 = arith.constant 0 : index
      %c0_84 = arith.constant 0 : index
      %86 = vector.load %arg10[%c0_83, %c0_84] : memref<2x128xf32, #tpu.memory_space<vmem>>, vector<2x128xf32>
      tpu.vector_store %arg10[%c0_83, %c0_84], %81 {strides = array<i32>} : memref<2x128xf32, #tpu.memory_space<vmem>>, vector<2x128xf32>,
      %c0_85 = arith.constant 0 : index
      %c0_86 = arith.constant 0 : index
      %87 = vector.load %arg11[%c0_85, %c0_86] : memref<2x128xf32, #tpu.memory_space<vmem>>, vector<2x128xf32>
      tpu.vector_store %arg11[%c0_85, %c0_86], %85 {strides = array<i32>} : memref<2x128xf32, #tpu.memory_space<vmem>>, vector<2x128xf32>,
      %c0_87 = arith.constant 0 : index
      %c0_88 = arith.constant 0 : index
      %88 = vector.load %arg4[%c0_87, %c0_88] : memref<128x128xf32, #tpu.memory_space<vmem>>, vector<128x128xf32>
      %cst_89 = arith.constant dense<0.000000e+00> : vector<2x128xf32>
      %89 = tpu.matmul %85, %88, %cst_89 {dimension_numbers = #tpu.dot_dimension_numbers<[1], [0], [0], [1], [0, 0, 1, 1], [], []>} : vector<2x128xf32>, vector<128x128xf32>, vector<2x128xf32> -> vector<2x128xf32>
      %c0_90 = arith.constant 0 : index
      %c0_91 = arith.constant 0 : index
      %90 = vector.load %arg12[%c0_90, %c0_91] : memref<2x128xf32, #tpu.memory_space<vmem>>, vector<2x128xf32>
      %cst_92 = arith.constant 2.000000e-01 : f32
      %91 = vector.broadcast %cst_92 : f32 to vector<2x128xf32>
      %92 = arith.mulf %90, %91 : vector<2x128xf32>
      %c0_93 = arith.constant 0 : index
      %c0_94 = arith.constant 0 : index
      %93 = vector.load %arg13[%c0_93, %c0_94] : memref<2x128xf32, #tpu.memory_space<vmem>>, vector<2x128xf32>
      %cst_95 = arith.constant 1.000000e+00 : f32
      %94 = vector.broadcast %cst_95 : f32 to vector<2x128xf32>
      %95 = arith.subf %94, %93 : vector<2x128xf32>
      %96 = arith.mulf %92, %95 : vector<2x128xf32>
      %97 = arith.addf %96, %89 : vector<2x128xf32>
      %cst_96 = arith.constant 5.000000e-01 : f32
      %98 = vector.broadcast %cst_96 : f32 to vector<2x128xf32>
      %99 = arith.cmpf ogt, %97, %98 : vector<2x128xf32>
      %100 = arith.extui %99 : vector<2x128xi1> to vector<2x128xi32>
      %101 = arith.sitofp %100 : vector<2x128xi32> to vector<2x128xf32>
      %c0_97 = arith.constant 0 : index
      %c0_98 = arith.constant 0 : index
      %102 = vector.load %arg12[%c0_97, %c0_98] : memref<2x128xf32, #tpu.memory_space<vmem>>, vector<2x128xf32>
      tpu.vector_store %arg12[%c0_97, %c0_98], %97 {strides = array<i32>} : memref<2x128xf32, #tpu.memory_space<vmem>>, vector<2x128xf32>,
      %c0_99 = arith.constant 0 : index
      %c0_100 = arith.constant 0 : index
      %103 = vector.load %arg13[%c0_99, %c0_100] : memref<2x128xf32, #tpu.memory_space<vmem>>, vector<2x128xf32>
      tpu.vector_store %arg13[%c0_99, %c0_100], %101 {strides = array<i32>} : memref<2x128xf32, #tpu.memory_space<vmem>>, vector<2x128xf32>,
      %c0_101 = arith.constant 0 : index
      %c0_102 = arith.constant 0 : index
      %104 = vector.load %arg14[%c0_101, %c0_102] : memref<2x128xf32, #tpu.memory_space<vmem>>, vector<2x128xf32>
      %105 = arith.addf %104, %101 : vector<2x128xf32>
      %c0_103 = arith.constant 0 : index
      %c0_104 = arith.constant 0 : index
      %106 = vector.load %arg14[%c0_103, %c0_104] : memref<2x128xf32, #tpu.memory_space<vmem>>, vector<2x128xf32>
      tpu.vector_store %arg14[%c0_103, %c0_104], %105 {strides = array<i32>} : memref<2x128xf32, #tpu.memory_space<vmem>>, vector<2x128xf32>,
    }
    %c0_26 = arith.constant 0 : index
    %c0_27 = arith.constant 0 : index
    %19 = vector.load %arg14[%c0_26, %c0_27] : memref<2x128xf32, #tpu.memory_space<vmem>>, vector<2x128xf32>
    %cst_28 = arith.constant 1.250000e-01 : f32
    %20 = vector.broadcast %cst_28 : f32 to vector<2x128xf32>
    %21 = arith.mulf %19, %20 : vector<2x128xf32>
    %c0_29 = arith.constant 0 : index
    %c0_30 = arith.constant 0 : index
    %22 = vector.load %arg5[%c0_29, %c0_30] : memref<2x128xf32, #tpu.memory_space<vmem>>, vector<2x128xf32>
    tpu.vector_store %arg5[%c0_29, %c0_30], %21 {strides = array<i32>} : memref<2x128xf32, #tpu.memory_space<vmem>>, vector<2x128xf32>,
    return
  }
}

</mosaic_0001>

<bundles_post_ra>
// kernel: scnn_forward.1
= control target key start
LH: loop header
LB: loop body
LE: loop exit
PB: predicated region body
PF: predicated region fallthrough
CT: control target
= control target key end

     0   :  { %10 = vsyncpa [#allocation12], 0  ;;  %v1497_v4 = vmov 0.0   ;;  %vm41_vm0 = vcmask 588800   ;;  %s2079_s0 = inlined_call_operand.vmem [shape: f32[16,72], index: 0, kind: input, shape index: {}]   ;;  %s2080_s1 = inlined_call_operand.vmem [shape: f32[72,256], index: 1, kind: input, shape index: {}]   ;;  %s2081_s2 = inlined_call_operand.vmem [shape: f32[256,64], index: 2, kind: input, shape index: {}]   ;;  %s2082_s3 = inlined_call_operand.vmem [shape: f32[512,128], index: 3, kind: input, shape index: {}]   ;;  %s2083_s4 = inlined_call_operand.vmem [shape: f32[128,128], index: 4, kind: input, shape index: {}]   ;;  %s2084_s5 = inlined_call_operand.hbm [shape: f32[2,128], index: 5, kind: output, shape index: {}]  }
   0x1   :  { %v40_v0 = vld [vmem:[%s2080_s1 + $0x88] sm:$0xff]  ;;  %v39_v1 = vld [vmem:[%s2080_s1 + $0x80] sm:$0xff]  ;;  %v38_v2 = vld [vmem:[%s2080_s1 + $0x78] sm:$0xff]  ;;  %129 = vst [vmem:[#allocation3] sm:$0xff] %v1497_v4  ;;  %112 = vmatprep.mubr.f32.mxu0 %v1497_v4  ;;  %118 = vmatprep.mubr.f32.mxu1 %v1497_v4 }
   0x2   :  { %62 = vmatprep.subr.mxu0 %v40_v0  ;;  %1436 = vmatprep.subr.mxu1 %v40_v0  ;;  %v37_v3 = vld [vmem:[%s2080_s1 + $0x70] sm:$0xff]  ;;  %130 = vst [vmem:[#allocation3 + $0x18] sm:$0xff] %v1497_v4  ;;  %131 = vst [vmem:[#allocation3 + $0x8] sm:$0xff] %v1497_v4  ;;  %v36_v5 = vld [vmem:[%s2080_s1 + $0x68] sm:$0xff] }
   0x3   :  { %132 = vst [vmem:[#allocation3 + $0x10] sm:$0xff] %v1497_v4  ;;  %133 = vst [vmem:[#allocation4] sm:$0xff] %v1497_v4  ;;  %63 = vmatpush1.msra.mxu0 %v39_v1  ;;  %1445 = vmatpush1.msra.mxu1 %v39_v1  ;;  %v35_v6 = vld [vmem:[%s2080_s1 + $0x60] sm:$0xff]  ;;  %v34_v7 = vld [vmem:[%s2080_s1 + $0x58] sm:$0xff] }
   0x4   :  { %134 = vst [vmem:[#allocation4 + $0x8] sm:$0xff] %v1497_v4  ;;  %135 = vst [vmem:[#allocation4 + $0x10] sm:$0xff] %v1497_v4  ;;  %64 = vmatprep.subr.mxu0 %v38_v2  ;;  %1437 = vmatprep.subr.mxu1 %v38_v2  ;;  %v33_v8 = vld [vmem:[%s2080_s1 + $0x50] sm:$0xff]  ;;  %v32_v9 = vld [vmem:[%s2080_s1 + $0x48] sm:$0xff] }
   0x5   :  { %136 = vst [vmem:[#allocation4 + $0x18] sm:$0xff] %v1497_v4  ;;  %137 = vst [vmem:[#allocation6] sm:$0x3] %v1497_v4  ;;  %65 = vmatpush1.msra.mxu0 %v37_v3  ;;  %1446 = vmatpush1.msra.mxu1 %v37_v3  ;;  %v31_v10 = vld [vmem:[%s2080_s1 + $0x40] sm:$0xff]  ;;  %v30_v11 = vld [vmem:[%s2080_s1 + $0x38] sm:$0xff] }
   0x6   :  { %138 = vst [vmem:[#allocation7] sm:$0x3] %v1497_v4  ;;  %139 = vst [vmem:[#allocation8] sm:$0x3] %v1497_v4  ;;  %66 = vmatprep.subr.mxu0 %v36_v5  ;;  %1438 = vmatprep.subr.mxu1 %v36_v5  ;;  %v29_v12 = vld [vmem:[%s2080_s1 + $0x30] sm:$0xff]  ;;  %v28_v13 = vld [vmem:[%s2080_s1 + $0x28] sm:$0xff] }
   0x7   :  { %140 = vst [vmem:[#allocation9] sm:$0x3] %v1497_v4  ;;  %141 = vst [vmem:[#allocation10] sm:$0x3] %v1497_v4  ;;  %67 = vmatpush1.msra.mxu0 %v35_v6  ;;  %1447 = vmatpush1.msra.mxu1 %v35_v6  ;;  %v27_v14 = vld [vmem:[%s2080_s1 + $0x20] sm:$0xff]  ;;  %v26_v15 = vld [vmem:[%s2080_s1 + $0x18] sm:$0xff] }
   0x8   :  { %68 = vmatprep.subr.mxu0 %v34_v7  ;;  %1439 = vmatprep.subr.mxu1 %v34_v7  ;;  %v25_v16 = vld [vmem:[%s2080_s1 + $0x10] sm:$0xff]  ;;  %v24_v17 = vld [vmem:[%s2080_s1 + $0x8] sm:$0xff]  ;;  %v23_v18 = vld [vmem:[%s2080_s1] sm:$0xff]  ;;  %s1607_s1 = smov 0  }
   0x9   :  { %69 = vmatpush1.msra.mxu0 %v33_v8  ;;  %1448 = vmatpush1.msra.mxu1 %v33_v8  ;;  %v21_v19 = vld [vmem:[%s2079_s0] sm:$0xff]  ;;  %v22_v20 = vld [vmem:[%s2079_s0 + $0x8] sm:$0xff] }
   0xa   :  { %70 = vmatprep.subr.mxu0 %v32_v9  ;;  %1440 = vmatprep.subr.mxu1 %v32_v9 }
   0xb   :  { %71 = vmatpush1.msra.mxu0 %v31_v10  ;;  %1449 = vmatpush1.msra.mxu1 %v31_v10 }
   0xc   :  { %72 = vmatprep.subr.mxu0 %v30_v11  ;;  %1441 = vmatprep.subr.mxu1 %v30_v11 }
   0xd   :  { %73 = vmatpush1.msra.mxu0 %v29_v12  ;;  %1450 = vmatpush1.msra.mxu1 %v29_v12 }
   0xe   :  { %74 = vmatprep.subr.mxu0 %v28_v13  ;;  %1442 = vmatprep.subr.mxu1 %v28_v13 }
   0xf   :  { %75 = vmatpush1.msra.mxu0 %v27_v14  ;;  %1451 = vmatpush1.msra.mxu1 %v27_v14 }
  0x10   :  { %76 = vmatprep.subr.mxu0 %v26_v15  ;;  %1443 = vmatprep.subr.mxu1 %v26_v15 }
  0x11   :  { %77 = vmatpush1.msra.mxu0 %v25_v16  ;;  %1452 = vmatpush1.msra.mxu1 %v25_v16 }
  0x12   :  { %78 = vmatprep.subr.mxu0 %v24_v17  ;;  %1444 = vmatprep.subr.mxu1 %v24_v17 }
  0x13   :  { %79 = vmatpush1.msra.mxu0 %v23_v18  ;;  %1453 = vmatpush1.msra.mxu1 %v23_v18 }
  0x14   :  { %1101 = vmatmul.mubr.msk.f32.vlgmr.msra.gmra.mxu0 %vm41_vm0, %v21_v19  ;;  %1102 = vmatmul.mubr.msk.f32.vlgmr.msra.gmra.mxu1 %vm41_vm0, %v22_v20 }
  0xd4   :  { %v114_v21 = vpop.f32.mrf.mxu0  ;;  %v120_v22 = vpop.f32.mrf.mxu1 }
  0xd5   :  { %125 = vst [vmem:[#allocation2 + $0x10] sm:$0xff] %v114_v21  ;;  %127 = vst [vmem:[#allocation2 + $0x18] sm:$0xff] %v120_v22 }
  0xd6   :  { %v116_v23 = vpop.f32.mrf.mxu0  ;;  %v122_v24 = vpop.f32.mrf.mxu1 }
  0xd7   :  { %126 = vst [vmem:[#allocation2] sm:$0xff] %v116_v23  ;;  %128 = vst [vmem:[#allocation2 + $0x8] sm:$0xff] %v122_v24 }
  0xd8 LB: > { %v227_v25 = vld [vmem:[%s2081_s2 + $0xf8] sm:$0xff]  ;;  %v226_v27 = vld [vmem:[%s2081_s2 + $0xf0] sm:$0xff]  ;;  %v1498_v29 = vmov 0.0   ;;  %v225_v30 = vld [vmem:[%s2081_s2 + $0xe8] sm:$0xff]  ;;  %v1499_v14 = vmov 1.0   ;;  %vm1500_vm5 = vmmov 0   ;;  %s1495_s1 = sphi %s1607_s1, %s147_s1  }
  0xd9   : > { %v211_v26 = vld [vmem:[%s2081_s2 + $0x78] sm:$0xff]  ;;  %1122 = vmatprep.subr.mxu0 %v227_v25  ;;  %v210_v28 = vld [vmem:[%s2081_s2 + $0x70] sm:$0xff]  ;;  %1249 = vmatprep.subr.mxu1 %v1498_v29  ;;  %v209_v31 = vld [vmem:[%s2081_s2 + $0x68] sm:$0xff]  ;;  %vm303_vm6 = vcmask 523264   ;;  %s147_s1 = sadd.s32 1, %s1495_s1  }
  0xda   : > { %1123 = vmatpush3.msra.mxu0 %v211_v26  ;;  %v224_v32 = vld [vmem:[%s2081_s2 + $0xe0] sm:$0xff]  ;;  %v223_v34 = vld [vmem:[%s2081_s2 + $0xd8] sm:$0xff]  ;;  %v222_v36 = vld [vmem:[%s2081_s2 + $0xd0] sm:$0xff]  ;;  %1265 = vmatprep.mubr.msk.f32.mxu1 %vm1500_vm5, %v1498_v29  ;;  %p144_p0 = scmp.ge.s32.totalorder %s147_s1, 8  }
  0xdb   : > { %1124 = vmatprep.subr.mxu0 %v226_v27  ;;  %v208_v33 = vld [vmem:[%s2081_s2 + $0x60] sm:$0xff]  ;;  %v207_v35 = vld [vmem:[%s2081_s2 + $0x58] sm:$0xff]  ;;  %v206_v37 = vld [vmem:[%s2081_s2 + $0x50] sm:$0xff]  ;;  %s1501_s23 = smov (%p144_p0), [#allocation11]  }
  0xdc   : > { %1125 = vmatpush3.msra.mxu0 %v210_v28  ;;  %v221_v38 = vld [vmem:[%s2081_s2 + $0xc8] sm:$0xff]  ;;  %v220_v40 = vld [vmem:[%s2081_s2 + $0xc0] sm:$0xff]  ;;  %v149_v41 = vld [vmem:[#allocation3 + $0x18] sm:$0xff]  ;;  %s1088_s24 = sshll.u32 (%p144_p0), %s1501_s23, 4  ;;  %s1089_s24 = int_to_ptr.vmem [resolvable:$true] %s1088_s24 }
  0xdd   : > { %1126 = vmatprep.subr.mxu0 %v225_v30  ;;  %v205_v39 = vld [vmem:[%s2081_s2 + $0x48] sm:$0xff]  ;;  %v204_v42 = vld [vmem:[%s2081_s2 + $0x40] sm:$0xff]  ;;  %v153_v43 = vmul.f32 0.2, %v149_v41  ;;  %v219_v46 = vld [vmem:[%s2081_s2 + $0xb8] sm:$0xff]  ;;  %s1467_s25 = scalar_lea.vmem (%p144_p0), %s1089_s24, 32  ;;  %p1472_p2 = scmp.lt.s32.totalorder (%p144_p0), %s1089_s24, %s1089_s24 }
  0xde   : > { %1127 = vmatpush3.msra.mxu0 %v209_v31  ;;  %v157_v44 = vld [vmem:[#allocation4 + $0x8] sm:$0xff]  ;;  %v148_v45 = vld [vmem:[#allocation3] sm:$0xff]  ;;  %v151_v50 = vld [vmem:[#allocation3 + $0x10] sm:$0xff]  ;;  %p1468_p1 = scmp.ne.s32.totalorder (%p144_p0), %s1089_s24, %s1467_s25  ;;  %p1473_p3 = scmp.lt.s32.totalorder (%p144_p0), %s1467_s25, %s1467_s25 }
  0xdf   : > { %1128 = vmatprep.subr.mxu0 %v224_v32  ;;  %v161_v47 = vsub.f32 1.0, %v157_v44  ;;  %v152_v48 = vmul.f32 0.2, %v148_v45  ;;  %v156_v49 = vld [vmem:[#allocation4] sm:$0xff]  ;;  %v155_v53 = vmul.f32 0.2, %v151_v50 }
  0xe0   : > { %1129 = vmatpush3.msra.mxu0 %v208_v33  ;;  %v169_v51 = vld [vmem:[#allocation2] sm:$0xff]  ;;  %v160_v52 = vsub.f32 1.0, %v156_v49  ;;  %v159_v54 = vld [vmem:[#allocation4 + $0x18] sm:$0xff]  ;;  %v150_v55 = vld [vmem:[#allocation3 + $0x8] sm:$0xff]  ;;  %p1474_p4 = por (%p144_p0), %p1473_p3, %p1472_p2 }
  0xe1   : > { %1130 = vmatprep.subr.mxu0 %v223_v34  ;;  %v165_v56 = vmul.f32 %v161_v47, %v153_v43  ;;  %v168_v57 = vld [vmem:[#allocation2 + $0x10] sm:$0xff]  ;;  %v163_v58 = vsub.f32 1.0, %v159_v54  ;;  %v154_v59 = vmul.f32 0.2, %v150_v55  ;;  %v323_v61 = vld [vmem:[%s2082_s3 + $0x78] sm:$0xff]  ;;  %v171_v0 = vld [vmem:[#allocation2 + $0x8] sm:$0xff] }
  0xe2   : > { %1131 = vmatpush3.msra.mxu0 %v207_v35  ;;  %v158_v60 = vld [vmem:[#allocation4 + $0x10] sm:$0xff]  ;;  %v203_v62 = vld [vmem:[%s2081_s2 + $0x38] sm:$0xff]  ;;  %v164_v63 = vmul.f32 %v160_v52, %v152_v48  ;;  %1250 = vmatpush3.msra.mxu1 %v323_v61  ;;  %v217_v10 = vld [vmem:[%s2081_s2 + $0xa8] sm:$0xff]  ;;  %p1475_p5 = pnand (%p144_p0), %p1474_p4, %p1468_p1 }
  0xe3   : > { %1132 = vmatprep.subr.mxu0 %v222_v36  ;;  %v162_v1 = vsub.f32 1.0, %v158_v60  ;;  %v322_v2 = vld [vmem:[%s2082_s3 + $0x70] sm:$0xff]  ;;  %v173_v4 = vadd.f32 %v169_v51, %v165_v56  ;;  %v167_v5 = vmul.f32 %v163_v58, %v155_v53  ;;  %v170_v6 = vld [vmem:[#allocation2 + $0x18] sm:$0xff]  ;;  %1251 = vmatprep.subr.mxu1 %v1498_v29  ;;  %v201_v12 = vld [vmem:[%s2081_s2 + $0x28] sm:$0xff] }
  0xe4   : > { %1133 = vmatpush3.msra.mxu0 %v206_v37  ;;  %v218_v3 = vld [vmem:[%s2081_s2 + $0xb0] sm:$0xff]  ;;  %v172_v8 = vadd.f32 %v168_v57, %v164_v63  ;;  %1252 = vmatpush3.msra.mxu1 %v322_v2  ;;  %v216_v16 = vld [vmem:[%s2081_s2 + $0xa0] sm:$0xff]  ;;  %v215_v20 = vld [vmem:[%s2081_s2 + $0x98] sm:$0xff] }
  0xe5   : > { %1134 = vmatprep.subr.mxu0 %v221_v38  ;;  %v202_v7 = vld [vmem:[%s2081_s2 + $0x30] sm:$0xff]  ;;  %v166_v9 = vmul.f32 %v162_v1, %v154_v59  ;;  %vm177_vm1 = vcmp.gt.f32.partialorder %v173_v4, 0.5  ;;  %189 = vst [vmem:[#allocation3 + $0x18] sm:$0xff] %v173_v4  ;;  %v175_v11 = vadd.f32 %v171_v0, %v167_v5  ;;  %1253 = vmatprep.subr.mxu1 %v1498_v29  ;;  %v200_v18 = vld [vmem:[%s2081_s2 + $0x20] sm:$0xff]  ;;  %v199_v22 = vld [vmem:[%s2081_s2 + $0x18] sm:$0xff] }
  0xe6   : > { %1135 = vmatpush3.msra.mxu0 %v205_v39  ;;  %v1104_v13 = vsel %vm177_vm1, 1.0, %v1498_v29  ;;  %1107 = vmatprep.mubr.msk.f32.mxu0 %vm177_vm1, %v1499_v14  ;;  %vm176_vm2 = vcmp.gt.f32.partialorder %v172_v8, 0.5  ;;  %188 = vst [vmem:[#allocation3] sm:$0xff] %v172_v8  ;;  %v214_v23 = vld [vmem:[%s2081_s2 + $0x90] sm:$0xff]  ;;  %v213_v25 = vld [vmem:[%s2081_s2 + $0x88] sm:$0xff]  ;;  %v212_v27 = vld [vmem:[%s2081_s2 + $0x80] sm:$0xff] }
  0xe7   : > { %1136 = vmatprep.subr.mxu0 %v220_v40  ;;  %v174_v15 = vadd.f32 %v170_v6, %v166_v9  ;;  %193 = vst [vmem:[#allocation4 + $0x8] sm:$0xff] %v1104_v13  ;;  %v1103_v17 = vsel %vm176_vm2, 1.0, %v1498_v29  ;;  %vm179_vm3 = vcmp.gt.f32.partialorder %v175_v11, 0.5  ;;  %191 = vst [vmem:[#allocation3 + $0x10] sm:$0xff] %v175_v11  ;;  %v198_v24 = vld [vmem:[%s2081_s2 + $0x10] sm:$0xff]  ;;  %v197_v26 = vld [vmem:[%s2081_s2 + $0x8] sm:$0xff] }
  0xe8   : > { %1137 = vmatpush3.msra.mxu0 %v204_v42  ;;  %192 = vst [vmem:[#allocation4] sm:$0xff] %v1103_v17  ;;  %v1106_v19 = vsel %vm179_vm3, 1.0, %v1498_v29  ;;  %v196_v28 = vld [vmem:[%s2081_s2] sm:$0xff]  ;;  %v321_v30 = vld [vmem:[%s2082_s3 + $0x68] sm:$0xff]  ;;  %v319_v32 = vld [vmem:[%s2082_s3 + $0x58] sm:$0xff] }
  0xe9   : > { %1138 = vmatprep.subr.mxu0 %v219_v46  ;;  %vm178_vm4 = vcmp.gt.f32.partialorder %v174_v15, 0.5  ;;  %190 = vst [vmem:[#allocation3 + $0x8] sm:$0xff] %v174_v15  ;;  %195 = vst [vmem:[#allocation4 + $0x18] sm:$0xff] %v1106_v19  ;;  %1254 = vmatpush3.msra.mxu1 %v321_v30  ;;  %v320_v31 = vld [vmem:[%s2082_s3 + $0x60] sm:$0xff]  ;;  %v318_v33 = vld [vmem:[%s2082_s3 + $0x50] sm:$0xff] }
  0xea   : > { %1139 = vmatpush3.msra.mxu0 %v203_v62  ;;  %v1105_v21 = vsel %vm178_vm4, 1.0, %v1498_v29  ;;  %1255 = vmatprep.subr.mxu1 %v1498_v29  ;;  %v317_v34 = vld [vmem:[%s2082_s3 + $0x48] sm:$0xff]  ;;  %v316_v35 = vld [vmem:[%s2082_s3 + $0x40] sm:$0xff]  ;;  %v644_v36 = vld [vmem:[%s2082_s3 + $0x138] sm:$0xff] }
  0xeb   : > { %1140 = vmatprep.subr.mxu0 %v218_v3  ;;  %194 = vst [vmem:[#allocation4 + $0x10] sm:$0xff] %v1105_v21  ;;  %1256 = vmatpush3.msra.mxu1 %v320_v31  ;;  %v643_v37 = vld [vmem:[%s2082_s3 + $0x130] sm:$0xff]  ;;  %v642_v38 = vld [vmem:[%s2082_s3 + $0x128] sm:$0xff]  ;;  %v641_v39 = vld [vmem:[%s2082_s3 + $0x120] sm:$0xff] }
  0xec   : > { %1141 = vmatpush3.msra.mxu0 %v202_v7  ;;  %1257 = vmatprep.subr.mxu1 %v1498_v29  ;;  %v640_v40 = vld [vmem:[%s2082_s3 + $0x118] sm:$0xff]  ;;  %v639_v41 = vld [vmem:[%s2082_s3 + $0x110] sm:$0xff]  ;;  %v638_v42 = vld [vmem:[%s2082_s3 + $0x108] sm:$0xff] }
  0xed   : > { %1142 = vmatprep.subr.mxu0 %v217_v10  ;;  %1258 = vmatpush3.msra.mxu1 %v319_v32  ;;  %v637_v43 = vld [vmem:[%s2082_s3 + $0x100] sm:$0xff]  ;;  %v314_v50 = vld [vmem:[%s2082_s3 + $0x38] sm:$0xff]  ;;  %v313_v52 = vld [vmem:[%s2082_s3 + $0x30] sm:$0xff] }
  0xee   : > { %1143 = vmatpush3.msra.mxu0 %v201_v12  ;;  %1259 = vmatprep.subr.mxu1 %v1498_v29  ;;  %v312_v53 = vld [vmem:[%s2082_s3 + $0x28] sm:$0xff]  ;;  %v810_v54 = vld [vmem:[%s2082_s3 + $0x1b8] sm:$0xff]  ;;  %v311_v56 = vld [vmem:[%s2082_s3 + $0x20] sm:$0xff] }
  0xef   : > { %1144 = vmatprep.subr.mxu0 %v216_v16  ;;  %1260 = vmatpush3.msra.mxu1 %v318_v33  ;;  %v809_v57 = vld [vmem:[%s2082_s3 + $0x1b0] sm:$0xff]  ;;  %v310_v58 = vld [vmem:[%s2082_s3 + $0x18] sm:$0xff]  ;;  %v808_v59 = vld [vmem:[%s2082_s3 + $0x1a8] sm:$0xff] }
  0xf0   : > { %1145 = vmatpush3.msra.mxu0 %v200_v18  ;;  %1261 = vmatprep.subr.mxu1 %v1498_v29  ;;  %v309_v60 = vld [vmem:[%s2082_s3 + $0x10] sm:$0xff]  ;;  %v807_v61 = vld [vmem:[%s2082_s3 + $0x1a0] sm:$0xff]  ;;  %v308_v62 = vld [vmem:[%s2082_s3 + $0x8] sm:$0xff] }
  0xf1   : > { %1146 = vmatprep.subr.mxu0 %v215_v20  ;;  %1262 = vmatpush3.msra.mxu1 %v317_v34  ;;  %v806_v63 = vld [vmem:[%s2082_s3 + $0x198] sm:$0xff]  ;;  %v307_v0 = vld [vmem:[%s2082_s3] sm:$0xff]  ;;  %v805_v1 = vld [vmem:[%s2082_s3 + $0x190] sm:$0xff] }
  0xf2   : > { %1147 = vmatpush3.msra.mxu0 %v199_v22  ;;  %1263 = vmatprep.subr.mxu1 %v1498_v29  ;;  %v478_v2 = vld [vmem:[%s2082_s3 + $0xb8] sm:$0xff]  ;;  %v477_v4 = vld [vmem:[%s2082_s3 + $0xb0] sm:$0xff]  ;;  %v804_v5 = vld [vmem:[%s2082_s3 + $0x188] sm:$0xff] }
  0xf3   : > { %1148 = vmatprep.subr.mxu0 %v214_v23  ;;  %1264 = vmatpush3.msra.mxu1 %v316_v35  ;;  %v476_v6 = vld [vmem:[%s2082_s3 + $0xa8] sm:$0xff]  ;;  %v803_v7 = vld [vmem:[%s2082_s3 + $0x180] sm:$0xff]  ;;  %v474_v10 = vld [vmem:[%s2082_s3 + $0x98] sm:$0xff] }
  0xf4   : > { %1149 = vmatpush3.msra.mxu0 %v198_v24  ;;  %1268 = vmatprep.subr.mxu1 %v1498_v29  ;;  %v475_v8 = vld [vmem:[%s2082_s3 + $0xa0] sm:$0xff]  ;;  %v473_v11 = vld [vmem:[%s2082_s3 + $0x90] sm:$0xff]  ;;  %v472_v12 = vld [vmem:[%s2082_s3 + $0x88] sm:$0xff] }
  0xf5   : > { %1150 = vmatprep.subr.mxu0 %v213_v25  ;;  %v471_v13 = vld [vmem:[%s2082_s3 + $0x80] sm:$0xff]  ;;  %v561_v15 = vld [vmem:[%s2082_s3 + $0xf8] sm:$0xff]  ;;  %v560_v17 = vld [vmem:[%s2082_s3 + $0xf0] sm:$0xff] }
  0xf6   : > { %1151 = vmatpush3.msra.mxu0 %v197_v26  ;;  %v559_v18 = vld [vmem:[%s2082_s3 + $0xe8] sm:$0xff]  ;;  %v558_v19 = vld [vmem:[%s2082_s3 + $0xe0] sm:$0xff]  ;;  %v557_v20 = vld [vmem:[%s2082_s3 + $0xd8] sm:$0xff] }
  0xf7   : > { %1152 = vmatprep.subr.mxu0 %v212_v27  ;;  %v556_v21 = vld [vmem:[%s2082_s3 + $0xd0] sm:$0xff]  ;;  %v555_v22 = vld [vmem:[%s2082_s3 + $0xc8] sm:$0xff]  ;;  %v554_v23 = vld [vmem:[%s2082_s3 + $0xc0] sm:$0xff] }
  0xf8   : > { %1153 = vmatpush3.msra.mxu0 %v196_v28  ;;  %v727_v24 = vld [vmem:[%s2082_s3 + $0x178] sm:$0xff]  ;;  %v726_v26 = vld [vmem:[%s2082_s3 + $0x170] sm:$0xff]  ;;  %v725_v27 = vld [vmem:[%s2082_s3 + $0x168] sm:$0xff] }
  0xf9   : > { %1108 = vmatmul.mubr.msk.f32.vlgmr.msra.gmra.mxu0 %vm176_vm2, %v1499_v14  ;;  %1325 = vmatprep.subr.mxu0 %v1498_v29  ;;  %v724_v28 = vld [vmem:[%s2082_s3 + $0x160] sm:$0xff]  ;;  %v723_v30 = vld [vmem:[%s2082_s3 + $0x158] sm:$0xff]  ;;  %v722_v31 = vld [vmem:[%s2082_s3 + $0x150] sm:$0xff] }
  0xfa   : > { %1109 = vmatprep.mubr.msk.f32.mxu0 %vm179_vm3, %v1499_v14  ;;  %1326 = vmatpush3.msra.mxu0 %v644_v36  ;;  %v721_v32 = vld [vmem:[%s2082_s3 + $0x148] sm:$0xff]  ;;  %v720_v33 = vld [vmem:[%s2082_s3 + $0x140] sm:$0xff]  ;;  %v893_v34 = vld [vmem:[%s2082_s3 + $0x1f8] sm:$0xff] }
  0xfb   : > { %1327 = vmatprep.subr.mxu0 %v1498_v29  ;;  %v892_v36 = vld [vmem:[%s2082_s3 + $0x1f0] sm:$0xff] }
  0xfc   : > { %1328 = vmatpush3.msra.mxu0 %v643_v37  ;;  %v891_v37 = vld [vmem:[%s2082_s3 + $0x1e8] sm:$0xff] }
  0xfd   : > { %1110 = vmatmul.mubr.msk.f32.gmra.mxu0 %vm178_vm4, %v1499_v14  ;;  %1329 = vmatprep.subr.mxu0 %v1498_v29 }
  0xfe   : > { %1341 = vmatprep.mubr.msk.f32.mxu0 %vm1500_vm5, %v1498_v29  ;;  %1330 = vmatpush3.msra.mxu0 %v642_v38  ;;  %v890_v38 = vld [vmem:[%s2082_s3 + $0x1e0] sm:$0xff] }
  0xff   : > { %1331 = vmatprep.subr.mxu0 %v1498_v29 }
 0x100   : > { %1332 = vmatpush3.msra.mxu0 %v641_v39  ;;  %v889_v39 = vld [vmem:[%s2082_s3 + $0x1d8] sm:$0xff] }
 0x101   : > { %1333 = vmatprep.subr.mxu0 %v1498_v29 }
 0x102   : > { %1334 = vmatpush3.msra.mxu0 %v640_v40  ;;  %v888_v40 = vld [vmem:[%s2082_s3 + $0x1d0] sm:$0xff] }
 0x103   : > { %1335 = vmatprep.subr.mxu0 %v1498_v29 }
 0x104   : > { %1336 = vmatpush3.msra.mxu0 %v639_v41  ;;  %v887_v41 = vld [vmem:[%s2082_s3 + $0x1c8] sm:$0xff] }
 0x105   : > { %1337 = vmatprep.subr.mxu0 %v1498_v29 }
 0x106   : > { %1338 = vmatpush3.msra.mxu0 %v638_v42  ;;  %v886_v42 = vld [vmem:[%s2082_s3 + $0x1c0] sm:$0xff] }
 0x107   : > { %1339 = vmatprep.subr.mxu0 %v1498_v29 }
 0x108   : > { %1340 = vmatpush3.msra.mxu0 %v637_v43 }
 0x109   : > { %1363 = vmatprep.subr.mxu0 %v1498_v29 }
 0x1b9   : > { %v1154_v44 = vpop.f32.mrf.mxu0 }
 0x1bb   : > { %v1155_v45 = vpop.f32.mrf.mxu0 }
 0x1bc   : > { %v1156_v46 = vadd.f32 %v1155_v45, %v1154_v44  ;;  %v994_v44 = vld [vmem:[%s2083_s4 + $0x78] sm:$0xff]  ;;  %v993_v45 = vld [vmem:[%s2083_s4 + $0x70] sm:$0xff] }
 0x1bd   : > { %v1157_v47 = vpop.f32.mrf.mxu0 }
 0x1be   : > { %304 = vst.msk [vmem:[#allocation5] sm:$0xff] %vm303_vm6, %v1156_v46  ;;  %v992_v46 = vld [vmem:[%s2083_s4 + $0x68] sm:$0xff] }
 0x1bf   : > { %v1158_v48 = vpop.f32.mrf.mxu0 }
 0x1c0   : > { %v1159_v49 = vadd.f32 %v1158_v48, %v1157_v47  ;;  %v991_v47 = vld [vmem:[%s2083_s4 + $0x60] sm:$0xff]  ;;  %v990_v48 = vld [vmem:[%s2083_s4 + $0x58] sm:$0xff] }
 0x1c2   : > { %305 = vst.msk [vmem:[#allocation5 + $0x8] sm:$0xff] %vm303_vm6, %v1159_v49  ;;  %v989_v49 = vld [vmem:[%s2083_s4 + $0x50] sm:$0xff] }
 0x1c5   : > { %v315_v51 = vld [vmem:[#allocation5 + $0x2] sm:$0x3]  ;;  %v306_v3 = vld [vmem:[#allocation5] sm:$0x3]  ;;  %v470_v16 = vld [vmem:[#allocation5 + $0x4] sm:$0x3] }
 0x1c6   : > { %1266 = vmatmul.mubr.msk.f32.vlgmr.msra.gmra.mxu1 %vm303_vm6, %v315_v51  ;;  %v553_v25 = vld [vmem:[#allocation5 + $0x6] sm:$0x3] }
 0x1c7   : > { %1269 = vmatpush3.msra.mxu1 %v314_v50  ;;  %1284 = vmatprep.mubr.msk.f32.mxu1 %vm1500_vm5, %v1498_v29  ;;  %v988_v50 = vld [vmem:[%s2083_s4 + $0x48] sm:$0xff]  ;;  %v987_v51 = vld [vmem:[%s2083_s4 + $0x40] sm:$0xff] }
 0x1c8   : > { %1270 = vmatprep.subr.mxu1 %v1498_v29 }
 0x1c9   : > { %1271 = vmatpush3.msra.mxu1 %v313_v52  ;;  %v636_v55 = vld [vmem:[#allocation5 + $0x8] sm:$0x3]  ;;  %v802_v9 = vld [vmem:[#allocation5 + $0xc] sm:$0x3]  ;;  %v719_v35 = vld [vmem:[#allocation5 + $0xa] sm:$0x3] }
 0x1ca   : > { %1272 = vmatprep.subr.mxu1 %v1498_v29  ;;  %1342 = vmatmul.mubr.msk.f32.vlgmr.msra.gmra.mxu0 %vm303_vm6, %v636_v55  ;;  %v885_v43 = vld [vmem:[#allocation5 + $0xe] sm:$0x3]  ;;  %v986_v52 = vld [vmem:[%s2083_s4 + $0x38] sm:$0xff]  ;;  %v983_v55 = vld [vmem:[%s2083_s4 + $0x20] sm:$0xff] }
 0x1cb   : > { %1273 = vmatpush3.msra.mxu1 %v312_v53  ;;  %1364 = vmatpush3.msra.mxu0 %v810_v54  ;;  %v985_v53 = vld [vmem:[%s2083_s4 + $0x30] sm:$0xff]  ;;  %v984_v54 = vld [vmem:[%s2083_s4 + $0x28] sm:$0xff] }
 0x1cc   : > { %1274 = vmatprep.subr.mxu1 %v1498_v29  ;;  %1365 = vmatprep.subr.mxu0 %v1498_v29 }
 0x1cd   : > { %1275 = vmatpush3.msra.mxu1 %v311_v56  ;;  %1366 = vmatpush3.msra.mxu0 %v809_v57  ;;  %v982_v56 = vld [vmem:[%s2083_s4 + $0x18] sm:$0xff]  ;;  %v981_v57 = vld [vmem:[%s2083_s4 + $0x10] sm:$0xff] }
 0x1ce   : > { %1276 = vmatprep.subr.mxu1 %v1498_v29  ;;  %1367 = vmatprep.subr.mxu0 %v1498_v29 }
 0x1cf   : > { %1277 = vmatpush3.msra.mxu1 %v310_v58  ;;  %1368 = vmatpush3.msra.mxu0 %v808_v59  ;;  %v980_v58 = vld [vmem:[%s2083_s4 + $0x8] sm:$0xff]  ;;  %v979_v59 = vld [vmem:[%s2083_s4] sm:$0xff] }
 0x1d0   : > { %1278 = vmatprep.subr.mxu1 %v1498_v29  ;;  %1369 = vmatprep.subr.mxu0 %v1498_v29 }
 0x1d1   : > { %1279 = vmatpush3.msra.mxu1 %v309_v60  ;;  %1370 = vmatpush3.msra.mxu0 %v807_v61 }
 0x1d2   : > { %1280 = vmatprep.subr.mxu1 %v1498_v29  ;;  %1371 = vmatprep.subr.mxu0 %v1498_v29 }
 0x1d3   : > { %1281 = vmatpush3.msra.mxu1 %v308_v62  ;;  %1372 = vmatpush3.msra.mxu0 %v806_v63 }
 0x1d4   : > { %1282 = vmatprep.subr.mxu1 %v1498_v29  ;;  %1373 = vmatprep.subr.mxu0 %v1498_v29 }
 0x1d5   : > { %1283 = vmatpush3.msra.mxu1 %v307_v0  ;;  %1374 = vmatpush3.msra.mxu0 %v805_v1 }
 0x1d6   : > { %1285 = vmatmul.mubr.msk.f32.vlgmr.msra.gmra.mxu1 %vm303_vm6, %v306_v3  ;;  %1287 = vmatprep.subr.mxu1 %v1498_v29 }
 0x1d7   : > { %1288 = vmatpush3.msra.mxu1 %v478_v2  ;;  %1303 = vmatprep.mubr.msk.f32.mxu1 %vm1500_vm5, %v1498_v29 }
 0x1d8   : > { %1289 = vmatprep.subr.mxu1 %v1498_v29  ;;  %1375 = vmatprep.subr.mxu0 %v1498_v29 }
 0x1d9   : > { %1290 = vmatpush3.msra.mxu1 %v477_v4  ;;  %1376 = vmatpush3.msra.mxu0 %v804_v5 }
 0x1da   : > { %1291 = vmatprep.subr.mxu1 %v1498_v29  ;;  %1377 = vmatprep.subr.mxu0 %v1498_v29 }
 0x1db   : > { %1292 = vmatpush3.msra.mxu1 %v476_v6  ;;  %1378 = vmatpush3.msra.mxu0 %v803_v7 }
 0x1dc   : > { %1293 = vmatprep.subr.mxu1 %v1498_v29  ;;  %1379 = vmatprep.mubr.msk.f32.mxu0 %vm1500_vm5, %v1498_v29 }
 0x1dd   : > { %1294 = vmatpush3.msra.mxu1 %v475_v8  ;;  %1380 = vmatmul.mubr.msk.f32.vlgmr.msra.gmra.mxu0 %vm303_vm6, %v802_v9 }
 0x1de   : > { %1295 = vmatprep.subr.mxu1 %v1498_v29  ;;  %1401 = vmatprep.subr.mxu0 %v1498_v29 }
 0x1df   : > { %1296 = vmatpush3.msra.mxu1 %v474_v10  ;;  %1433 = vmatprep.mubr.msk.f32.mxu0 %vm1500_vm5, %v1498_v29 }
 0x1e0   : > { %1297 = vmatprep.subr.mxu1 %v1498_v29  ;;  %1402 = vmatpush3.msra.mxu0 %v994_v44 }
 0x1e1   : > { %1298 = vmatpush3.msra.mxu1 %v473_v11  ;;  %1403 = vmatprep.subr.mxu0 %v1498_v29 }
 0x1e2   : > { %1299 = vmatprep.subr.mxu1 %v1498_v29  ;;  %1404 = vmatpush3.msra.mxu0 %v993_v45 }
 0x1e3   : > { %1300 = vmatpush3.msra.mxu1 %v472_v12  ;;  %1405 = vmatprep.subr.mxu0 %v1498_v29 }
 0x1e4   : > { %1301 = vmatprep.subr.mxu1 %v1498_v29  ;;  %1406 = vmatpush3.msra.mxu0 %v992_v46 }
 0x1e5   : > { %1302 = vmatpush3.msra.mxu1 %v471_v13  ;;  %1407 = vmatprep.subr.mxu0 %v1498_v29 }
 0x1e6   : > { %1304 = vmatmul.mubr.msk.f32.vlgmr.msra.gmra.mxu1 %vm303_vm6, %v470_v16  ;;  %1306 = vmatprep.subr.mxu1 %v1498_v29  ;;  %v970_v16 = vld [vmem:[#allocation7] sm:$0x3] }
 0x1e7   : > { %1307 = vmatpush3.msra.mxu1 %v561_v15  ;;  %1322 = vmatprep.mubr.msk.f32.mxu1 %vm1500_vm5, %v1498_v29  ;;  %v968_v15 = vld [vmem:[#allocation6] sm:$0x3] }
 0x1e8   : > { %1308 = vmatprep.subr.mxu1 %v1498_v29  ;;  %1408 = vmatpush3.msra.mxu0 %v991_v47 }
 0x1e9   : > { %1309 = vmatpush3.msra.mxu1 %v560_v17  ;;  %1409 = vmatprep.subr.mxu0 %v1498_v29 }
 0x1ea   : > { %1310 = vmatprep.subr.mxu1 %v1498_v29  ;;  %1410 = vmatpush3.msra.mxu0 %v990_v48 }
 0x1eb   : > { %1311 = vmatpush3.msra.mxu1 %v559_v18  ;;  %1411 = vmatprep.subr.mxu0 %v1498_v29  ;;  %v969_v18 = vmul.f32 0.2, %v968_v15 }
 0x1ec   : > { %1312 = vmatprep.subr.mxu1 %v1498_v29  ;;  %1412 = vmatpush3.msra.mxu0 %v989_v49 }
 0x1ed   : > { %1313 = vmatpush3.msra.mxu1 %v558_v19  ;;  %1413 = vmatprep.subr.mxu0 %v1498_v29  ;;  %v971_v19 = vsub.f32 1.0, %v970_v16 }
 0x1ee   : > { %1314 = vmatprep.subr.mxu1 %v1498_v29  ;;  %1414 = vmatpush3.msra.mxu0 %v988_v50 }
 0x1ef   : > { %1315 = vmatpush3.msra.mxu1 %v557_v20  ;;  %1415 = vmatprep.subr.mxu0 %v1498_v29 }
 0x1f0   : > { %1316 = vmatprep.subr.mxu1 %v1498_v29  ;;  %1416 = vmatpush3.msra.mxu0 %v987_v51 }
 0x1f1   : > { %1317 = vmatpush3.msra.mxu1 %v556_v21  ;;  %1417 = vmatprep.subr.mxu0 %v1498_v29  ;;  %v972_v21 = vmul.f32 %v971_v19, %v969_v18 }
 0x1f2   : > { %1318 = vmatprep.subr.mxu1 %v1498_v29  ;;  %1418 = vmatpush3.msra.mxu0 %v986_v52 }
 0x1f3   : > { %1319 = vmatpush3.msra.mxu1 %v555_v22  ;;  %1419 = vmatprep.subr.mxu0 %v1498_v29 }
 0x1f4   : > { %1320 = vmatprep.subr.mxu1 %v1498_v29  ;;  %1420 = vmatpush3.msra.mxu0 %v985_v53 }
 0x1f5   : > { %1321 = vmatpush3.msra.mxu1 %v554_v23  ;;  %1421 = vmatprep.subr.mxu0 %v1498_v29 }
 0x1f6   : > { %1323 = vmatmul.mubr.msk.f32.vlgmr.msra.gmra.mxu1 %vm303_vm6, %v553_v25  ;;  %1344 = vmatprep.subr.mxu1 %v1498_v29 }
 0x1f7   : > { %1345 = vmatpush3.msra.mxu1 %v727_v24  ;;  %1360 = vmatprep.mubr.msk.f32.mxu1 %vm1500_vm5, %v1498_v29 }
 0x1f8   : > { %1346 = vmatprep.subr.mxu1 %v1498_v29  ;;  %1422 = vmatpush3.msra.mxu0 %v984_v54 }
 0x1f9   : > { %1347 = vmatpush3.msra.mxu1 %v726_v26  ;;  %1423 = vmatprep.subr.mxu0 %v1498_v29 }
 0x1fa   : > { %1348 = vmatprep.subr.mxu1 %v1498_v29  ;;  %1424 = vmatpush3.msra.mxu0 %v983_v55 }
 0x1fb   : > { %1349 = vmatpush3.msra.mxu1 %v725_v27  ;;  %1425 = vmatprep.subr.mxu0 %v1498_v29  ;;  %v1065_v27 = vld [vmem:[#allocation8] sm:$0x3] }
 0x1fc   : > { %1350 = vmatprep.subr.mxu1 %v1498_v29  ;;  %1426 = vmatpush3.msra.mxu0 %v982_v56 }
 0x1fd   : > { %1351 = vmatpush3.msra.mxu1 %v724_v28  ;;  %1427 = vmatprep.subr.mxu0 %v1498_v29  ;;  %v1067_v28 = vld [vmem:[#allocation9] sm:$0x3] }
 0x1fe   : > { %1352 = vmatprep.subr.mxu1 %v1498_v29  ;;  %1428 = vmatpush3.msra.mxu0 %v981_v57 }
 0x1ff   : > { %1353 = vmatpush3.msra.mxu1 %v723_v30  ;;  %1429 = vmatprep.subr.mxu0 %v1498_v29  ;;  %v1066_v30 = vmul.f32 0.2, %v1065_v27 }
 0x200   : > { %1354 = vmatprep.subr.mxu1 %v1498_v29  ;;  %1430 = vmatpush3.msra.mxu0 %v980_v58 }
 0x201   : > { %1355 = vmatpush3.msra.mxu1 %v722_v31  ;;  %1431 = vmatprep.subr.mxu0 %v1498_v29  ;;  %v1068_v31 = vsub.f32 1.0, %v1067_v28 }
 0x202   : > { %1356 = vmatprep.subr.mxu1 %v1498_v29  ;;  %1432 = vmatpush3.msra.mxu0 %v979_v59 }
 0x203   : > { %1357 = vmatpush3.msra.mxu1 %v721_v32  ;;  %v1069_v32 = vmul.f32 %v1068_v31, %v1066_v30 }
 0x204   : > { %1358 = vmatprep.subr.mxu1 %v1498_v29 }
 0x205   : > { %1359 = vmatpush3.msra.mxu1 %v720_v33 }
 0x206   : > { %1361 = vmatmul.mubr.msk.f32.vlgmr.msra.gmra.mxu1 %vm303_vm6, %v719_v35  ;;  %1382 = vmatprep.subr.mxu1 %v1498_v29  ;;  %v1076_v35 = vld [vmem:[#allocation10] sm:$0x3] }
 0x207   : > { %1383 = vmatpush3.msra.mxu1 %v893_v34  ;;  %1398 = vmatprep.mubr.msk.f32.mxu1 %vm1500_vm5, %v1498_v29 }
 0x208   : > { %1384 = vmatprep.subr.mxu1 %v1498_v29 }
 0x209   : > { %1385 = vmatpush3.msra.mxu1 %v892_v36 }
 0x20a   : > { %1386 = vmatprep.subr.mxu1 %v1498_v29 }
 0x20b   : > { %1387 = vmatpush3.msra.mxu1 %v891_v37 }
 0x20c   : > { %1388 = vmatprep.subr.mxu1 %v1498_v29 }
 0x20d   : > { %1389 = vmatpush3.msra.mxu1 %v890_v38 }
 0x20e   : > { %1390 = vmatprep.subr.mxu1 %v1498_v29 }
 0x20f   : > { %1391 = vmatpush3.msra.mxu1 %v889_v39 }
 0x210   : > { %1392 = vmatprep.subr.mxu1 %v1498_v29 }
 0x211   : > { %1393 = vmatpush3.msra.mxu1 %v888_v40 }
 0x212   : > { %1394 = vmatprep.subr.mxu1 %v1498_v29 }
 0x213   : > { %1395 = vmatpush3.msra.mxu1 %v887_v41 }
 0x214   : > { %1396 = vmatprep.subr.mxu1 %v1498_v29 }
 0x215   : > { %1397 = vmatpush3.msra.mxu1 %v886_v42 }
 0x216   : > { %1399 = vmatmul.mubr.msk.f32.vlgmr.msra.gmra.mxu1 %vm303_vm6, %v885_v43 }
 0x286   : > { %v393_v60 = vpop.f32.mrf.mxu1 }
 0x288   : > { %v1267_v61 = vpop.f32.mrf.mxu1 }
 0x28a   : > { %v714_v62 = vpop.f32.mrf.mxu0 }
 0x28c   : > { %v1343_v63 = vpop.f32.mrf.mxu0 }
 0x296   : > { %v466_v0 = vpop.f32.mrf.mxu1 }
 0x297   : > { %v467_v6 = vadd.f32 %v466_v0, %v393_v60 }
 0x298   : > { %v1286_v1 = vpop.f32.mrf.mxu1 }
 0x29d   : > { %v880_v2 = vpop.f32.mrf.mxu0 }
 0x29f   : > { %v1381_v3 = vpop.f32.mrf.mxu0 }
 0x2a6   : > { %v548_v4 = vpop.f32.mrf.mxu1 }
 0x2a7   : > { %v552_v7 = vadd.f32 %v548_v4, %v467_v6 }
 0x2a8   : > { %v1305_v5 = vpop.f32.mrf.mxu1 }
 0x2b6   : > { %v631_v8 = vpop.f32.mrf.mxu1 }
 0x2b7   : > { %v635_v9 = vadd.f32 %v631_v8, %v552_v7 }
 0x2b8   : > { %v1324_v10 = vpop.f32.mrf.mxu1 }
 0x2b9   : > { %v718_v11 = vadd.f32 %v714_v62, %v635_v9 }
 0x2c6   : > { %v797_v12 = vpop.f32.mrf.mxu1 }
 0x2c7   : > { %v801_v17 = vadd.f32 %v797_v12, %v718_v11 }
 0x2c8   : > { %v1362_v13 = vpop.f32.mrf.mxu1 }
 0x2c9   : > { %v884_v20 = vadd.f32 %v880_v2, %v801_v17 }
 0x2d6   : > { %v963_v22 = vpop.f32.mrf.mxu1 }
 0x2d7   : > { %v967_v23 = vadd.f32 %v963_v22, %v884_v20 }
 0x2d8   : > { %v1400_v24 = vpop.f32.mrf.mxu1 }
 0x2d9   : > { %v973_v25 = vadd.f32 %v972_v21, %v967_v23 }
 0x2db   : > { %vm974_vm7 = vcmp.gt.f32.partialorder %v973_v25, 0.5  ;;  %977 = vst [vmem:[#allocation6] sm:$0x3] %v973_v25 }
 0x2dc   : > { %v1119_v26 = vsel %vm974_vm7, 1.0, %v1498_v29  ;;  %1434 = vmatmul.mubr.msk.f32.vlgmr.msra.gmra.mxu0 %vm974_vm7, %v1499_v14 }
 0x2dd   : > { %978 = vst [vmem:[#allocation7] sm:$0x3] %v1119_v26 }
 0x39c   : > { %v1061_v33 = vpop.f32.mrf.mxu0 }
 0x39d   : > { %v1070_v34 = vadd.f32 %v1069_v32, %v1061_v33 }
 0x39e   : > { %v1435_v36 = vpop.f32.mrf.mxu0 }
 0x39f   : > { %vm1071_vm8 = vcmp.gt.f32.partialorder %v1070_v34, 0.5  ;;  %1074 = vst [vmem:[#allocation8] sm:$0x3] %v1070_v34  ;;  %146 = sbr.rel (!%p144_p0) target bundleno = 216 (0xd8), region = 47 }
 0x3a0   : > { %v1121_v37 = vsel %vm1071_vm8, 1.0, %v1498_v29 }
 0x3a1   : > { %1075 = vst [vmem:[#allocation9] sm:$0x3] %v1121_v37  ;;  %v1077_v38 = vadd.f32 %v1121_v37, %v1076_v35 }
 0x3a3   : > { %1078 = vst [vmem:[#allocation10] sm:$0x3] %v1077_v38 }
 0x3aa   :  { %v1079_v14 = vld [vmem:[#allocation10] sm:$0x3] }
 0x3ab   :  { %v1080_v39 = vmul.f32 0.125, %v1079_v14 }
 0x3ad   :  { %1081 = vst [vmem:[#allocation11] sm:$0x3] %v1080_v39 }
 0x3ae   :  { %1478 = shalt.err (!%p1475_p5)
}
 0x3af   :  { %1091 = dma.vmem_to_hbm [thread:$0]  %s1089_s24, 32, %s2084_s5, [#allocation12]  }
 0x3b0   :  { %1491 = dma.done.wait [#allocation12], 32  }
 0x3b1   :  { %1492 = vsyncadd [#allocation12], 4294967264 }
 0x3b2   :  { %1095 = vsyncpa [#allocation12], 1 }

</bundles_post_ra>
